<compile_context>
chip_gen: v7x
topology: tpu7x:2x2x1
jax: 0.10.0
libtpu: 0.0.40
codegen_flags: <defaults>
</compile_context>

<pallas_src>
import jax
import jax.numpy as jnp
from jax.experimental import pallas as pl
from jax.experimental.pallas import tpu as pltpu


def _bpa_kernel(x_ref, w1_ref, b1_ref, w2_ref, b2_ref, o_ref):
    # x_ref/o_ref: (C, TL) -- batch dim squeezed, L on the lane axis.
    # w1_ref: (Cm, C)  b1_ref: (Cm, 1)  w2_ref: (C, Cm)  b2_ref: (C, 1)
    x = x_ref[...]                                   # (C, TL) f32
    xm = x.astype(w1_ref.dtype)                      # matmul operand dtype

    # Conv1d(C -> Cm, k=1) + ReLU  (channel matmul on the MXU, f32 accumulate)
    h = jnp.dot(w1_ref[...], xm, preferred_element_type=jnp.float32)
    h = jnp.maximum(h + b1_ref[...], 0.0)

    # Conv1d(Cm -> C, k=1) + Sigmoid (exp + reciprocal both on the EUP slot)
    a = jnp.dot(w2_ref[...], h.astype(w2_ref.dtype),
                preferred_element_type=jnp.float32)
    a = a + b2_ref[...]
    a = pl.reciprocal(1.0 + jnp.exp(-a), approx=True)

    # Gate in f32.  Any garbage in tail lanes of a boundary block stays in its
    # lane (no lane-axis reduction anywhere) and is masked on writeback.
    o_ref[...] = (x * a).astype(o_ref.dtype)


def bpa_forward(x_ncl, w1, b1, w2, b2, *, tile_l=16384,
                matmul_dtype=jnp.bfloat16,
                vmem_limit_bytes=48 * 1024 * 1024):
    """BPA forward on native NCL layout.

    x_ncl: (N, C, L) float32
    w1:    (Cm, C)  -- PyTorch Conv1d(C, Cm, 1) weight, squeezed
    b1:    (Cm,)
    w2:    (C, Cm)  -- PyTorch Conv1d(Cm, C, 1) weight, squeezed
    b2:    (C,)
    matmul_dtype: operand dtype for the two channel matmuls (accumulation is
        always f32).  Use jnp.float32 for strict parity with the f32 reference.
    """
    N, C, L = x_ncl.shape
    Cm = w1.shape[0]

    # Balanced lane-dense tiling along L: every tile is a multiple of 128 and
    # <= the requested tile_l; the (single) ragged boundary block is handled by
    # Pallas' masked partial-block DMA -- no jnp.pad, no output slice.
    l_groups = pl.cdiv(L, 128)                  # 128-lane groups in L
    req_groups = max(1, tile_l // 128)
    n_tiles = pl.cdiv(l_groups, req_groups)     # grid extent along L
    tile_l = 128 * pl.cdiv(l_groups, n_tiles)   # balanced tile (<= requested)

    w1m = w1.astype(matmul_dtype)
    w2m = w2.astype(matmul_dtype)
    b1c = b1.reshape(Cm, 1).astype(jnp.float32)
    b2c = b2.reshape(C, 1).astype(jnp.float32)

    # NOTE(v7x): both grid axes are "parallel"; as long as N * n_tiles >= 2 the
    # two TensorCores both get work.  Keep the default 2-deep buffering unless
    # an xprof trace shows exposed DMA (then add pipeline_mode=pl.Buffered(3)).
    grid = (N, n_tiles)

    x_spec = pl.BlockSpec((pl.Squeezed(), C, tile_l), lambda n, l: (n, 0, l))
    o_spec = pl.BlockSpec((pl.Squeezed(), C, tile_l), lambda n, l: (n, 0, l))

    out = pl.pallas_call(
        _bpa_kernel,
        out_shape=jax.ShapeDtypeStruct((N, C, L), x_ncl.dtype),
        grid_spec=pltpu.PrefetchScalarGridSpec(
            num_scalar_prefetch=0,
            grid=grid,
            in_specs=[
                x_spec,                                          # x tile
                pl.BlockSpec((Cm, C), lambda n, l: (0, 0)),      # w1 (resident)
                pl.BlockSpec((Cm, 1), lambda n, l: (0, 0)),      # b1
                pl.BlockSpec((C, Cm), lambda n, l: (0, 0)),      # w2 (resident)
                pl.BlockSpec((C, 1), lambda n, l: (0, 0)),       # b2
            ],
            out_specs=o_spec,
        ),
        compiler_params=pltpu.CompilerParams(
            dimension_semantics=("parallel", "parallel"),
            vmem_limit_bytes=vmem_limit_bytes,
        ),
    )(x_ncl, w1m, b1c, w2m, b2c)
    return out


def bpa_reference(x_ncl, w1, b1, w2, b2):
    """Plain-JAX f32 reference matching the PyTorch forward (NCL layout)."""
    h = jnp.maximum(
        jnp.einsum("mc,ncl->nml", w1, x_ncl) + b1[None, :, None], 0.0)
    a = jax.nn.sigmoid(
        jnp.einsum("cm,nml->ncl", w2, h) + b2[None, :, None])
    return x_ncl * a


if __name__ == "__main__":
    N, C, L = 2, 32, 600          # L intentionally not a multiple of 128
    Cm = C // 2

    key = jax.random.PRNGKey(0)
    kx, kw1, kb1, kw2, kb2 = jax.random.split(key, 5)

    x = jax.random.normal(kx, (N, C, L), dtype=jnp.float32)

    # Deterministic parameter init (PyTorch Conv1d-like uniform scale),
    # stored in PyTorch Conv1d weight orientation: (out_channels, in_channels).
    s1 = 1.0 / jnp.sqrt(jnp.float32(C))
    s2 = 1.0 / jnp.sqrt(jnp.float32(Cm))
    w1 = jax.random.uniform(kw1, (Cm, C), jnp.float32, -s1, s1)
    b1 = jax.random.uniform(kb1, (Cm,), jnp.float32, -s1, s1)
    w2 = jax.random.uniform(kw2, (C, Cm), jnp.float32, -s2, s2)
    b2 = jax.random.uniform(kb2, (C,), jnp.float32, -s2, s2)

    ref = bpa_reference(x, w1, b1, w2, b2)

    # 1) f32 matmul path, small tile -> exercises multi-tile grid + ragged tail
    #    masking (3 tiles of 256 columns covering L=600).
    out_f32 = bpa_forward(x, w1, b1, w2, b2, tile_l=256,
                          matmul_dtype=jnp.float32)
    out_f32 = jax.block_until_ready(out_f32)
    assert out_f32.shape == (N, C, L)
    assert jnp.allclose(out_f32, ref, atol=2e-2, rtol=2e-2)  # approx recip

    # 2) Default bf16-operand path with the production tile size (single
    #    partial tile here).  Looser tolerance for the bf16 matmul operands.
    out_bf16 = bpa_forward(x, w1, b1, w2, b2)
    out_bf16 = jax.block_until_ready(out_bf16)
    assert out_bf16.shape == (N, C, L)
    assert jnp.allclose(out_bf16, ref, atol=3e-2, rtol=3e-2)

    print("KERNEL_OK")
</pallas_src>

<mosaic_0001>
module attributes {stable_mosaic.version = 11 : i64} {
  func.func @_bpa_kernel(%arg0: i32, %arg1: i32, %arg2: memref<1x32x256xf32, #tpu.memory_space<vmem>>, %arg3: memref<16x32xf32, #tpu.memory_space<vmem>>, %arg4: memref<16x1xf32, #tpu.memory_space<vmem>>, %arg5: memref<32x16xf32, #tpu.memory_space<vmem>>, %arg6: memref<32x1xf32, #tpu.memory_space<vmem>>, %arg7: memref<1x32x256xf32, #tpu.memory_space<vmem>>) attributes {dimension_semantics = [#tpu.dimension_semantics<parallel>, #tpu.dimension_semantics<parallel>], iteration_bounds = array<i64: 2, 3>, scalar_prefetch = 0 : i64, scratch_operands = 0 : i64, tpu.core_type = #tpu.core_type<tc>, window_params = [{transform_indices = @transform_0, window_bounds = array<i64: 1, 32, 256>}, {pipeline_mode = #tpu.pipeline_mode<synchronous>, transform_indices = @transform_1, window_bounds = array<i64: 16, 32>}, {pipeline_mode = #tpu.pipeline_mode<synchronous>, transform_indices = @transform_2, window_bounds = array<i64: 16, 1>}, {pipeline_mode = #tpu.pipeline_mode<synchronous>, transform_indices = @transform_3, window_bounds = array<i64: 32, 16>}, {pipeline_mode = #tpu.pipeline_mode<synchronous>, transform_indices = @transform_4, window_bounds = array<i64: 32, 1>}, {transform_indices = @transform_5, window_bounds = array<i64: 1, 32, 256>}]} {
    %c0 = arith.constant 0 : index
    %c0_0 = arith.constant 0 : index
    %c0_1 = arith.constant 0 : index
    %0 = vector.load %arg2[%c0, %c0_0, %c0_1] : memref<1x32x256xf32, #tpu.memory_space<vmem>>, vector<1x32x256xf32>
    %1 = vector.shape_cast %0 : vector<1x32x256xf32> to vector<32x256xf32>
    %c0_2 = arith.constant 0 : index
    %c0_3 = arith.constant 0 : index
    %2 = vector.load %arg3[%c0_2, %c0_3] : memref<16x32xf32, #tpu.memory_space<vmem>>, vector<16x32xf32>
    %cst = arith.constant dense<0.000000e+00> : vector<16x256xf32>
    %3 = tpu.matmul %2, %1, %cst {dimension_numbers = #tpu.dot_dimension_numbers<[1], [0], [0], [1], [0, 0, 1, 1], [], []>} : vector<16x32xf32>, vector<32x256xf32>, vector<16x256xf32> -> vector<16x256xf32>
    %c0_4 = arith.constant 0 : index
    %c0_5 = arith.constant 0 : index
    %4 = vector.load %arg4[%c0_4, %c0_5] : memref<16x1xf32, #tpu.memory_space<vmem>>, vector<16x1xf32>
    %5 = vector.broadcast %4 : vector<16x1xf32> to vector<16x256xf32>
    %6 = arith.addf %3, %5 : vector<16x256xf32>
    %cst_6 = arith.constant 0.000000e+00 : f32
    %7 = vector.broadcast %cst_6 : f32 to vector<16x256xf32>
    %8 = arith.maximumf %6, %7 : vector<16x256xf32>
    %c0_7 = arith.constant 0 : index
    %c0_8 = arith.constant 0 : index
    %9 = vector.load %arg5[%c0_7, %c0_8] : memref<32x16xf32, #tpu.memory_space<vmem>>, vector<32x16xf32>
    %cst_9 = arith.constant dense<0.000000e+00> : vector<32x256xf32>
    %10 = tpu.matmul %9, %8, %cst_9 {dimension_numbers = #tpu.dot_dimension_numbers<[1], [0], [0], [1], [0, 0, 1, 1], [], []>} : vector<32x16xf32>, vector<16x256xf32>, vector<32x256xf32> -> vector<32x256xf32>
    %c0_10 = arith.constant 0 : index
    %c0_11 = arith.constant 0 : index
    %11 = vector.load %arg6[%c0_10, %c0_11] : memref<32x1xf32, #tpu.memory_space<vmem>>, vector<32x1xf32>
    %12 = vector.broadcast %11 : vector<32x1xf32> to vector<32x256xf32>
    %13 = arith.addf %10, %12 : vector<32x256xf32>
    %cst_12 = arith.constant 0.000000e+00 : f32
    %14 = vector.broadcast %cst_12 : f32 to vector<32x256xf32>
    %15 = arith.subf %14, %13 : vector<32x256xf32>
    %16 = math.exp %15 : vector<32x256xf32>
    %cst_13 = arith.constant 1.000000e+00 : f32
    %17 = vector.broadcast %cst_13 : f32 to vector<32x256xf32>
    %18 = arith.addf %17, %16 : vector<32x256xf32>
    %19 = tpu.reciprocal %18 {approx = true} : vector<32x256xf32> -> vector<32x256xf32>
    %20 = arith.mulf %1, %19 : vector<32x256xf32>
    %c0_14 = arith.constant 0 : index
    %c0_15 = arith.constant 0 : index
    %c0_16 = arith.constant 0 : index
    %21 = vector.load %arg7[%c0_14, %c0_15, %c0_16] : memref<1x32x256xf32, #tpu.memory_space<vmem>>, vector<1x32x256xf32>
    %22 = vector.shape_cast %21 : vector<1x32x256xf32> to vector<32x256xf32>
    %23 = vector.shape_cast %20 : vector<32x256xf32> to vector<1x32x256xf32>
    tpu.vector_store %arg7[%c0_14, %c0_15, %c0_16], %23 {strides = array<i32>} : memref<1x32x256xf32, #tpu.memory_space<vmem>>, vector<1x32x256xf32>,
    return
  }
  func.func @transform_0(%arg0: i32, %arg1: i32) -> (i32, i32, i32) {
    %c0_i32 = arith.constant 0 : i32
    %c0_i32_0 = arith.constant 0 : i32
    return %arg0, %c0_i32, %arg1 : i32, i32, i32
  }
  func.func @transform_1(%arg0: i32, %arg1: i32) -> (i32, i32) {
    %c0_i32 = arith.constant 0 : i32
    %c0_i32_0 = arith.constant 0 : i32
    %c0_i32_1 = arith.constant 0 : i32
    return %c0_i32, %c0_i32_0 : i32, i32
  }
  func.func @transform_2(%arg0: i32, %arg1: i32) -> (i32, i32) {
    %c0_i32 = arith.constant 0 : i32
    %c0_i32_0 = arith.constant 0 : i32
    %c0_i32_1 = arith.constant 0 : i32
    return %c0_i32, %c0_i32_0 : i32, i32
  }
  func.func @transform_3(%arg0: i32, %arg1: i32) -> (i32, i32) {
    %c0_i32 = arith.constant 0 : i32
    %c0_i32_0 = arith.constant 0 : i32
    %c0_i32_1 = arith.constant 0 : i32
    return %c0_i32, %c0_i32_0 : i32, i32
  }
  func.func @transform_4(%arg0: i32, %arg1: i32) -> (i32, i32) {
    %c0_i32 = arith.constant 0 : i32
    %c0_i32_0 = arith.constant 0 : i32
    %c0_i32_1 = arith.constant 0 : i32
    return %c0_i32, %c0_i32_0 : i32, i32
  }
  func.func @transform_5(%arg0: i32, %arg1: i32) -> (i32, i32, i32) {
    %c0_i32 = arith.constant 0 : i32
    %c0_i32_0 = arith.constant 0 : i32
    return %arg0, %c0_i32, %arg1 : i32, i32, i32
  }
}

</mosaic_0001>

<bundles_post_ra>
// kernel: tpu_custom_call.1
= control target key start
LH: loop header
LB: loop body
LE: loop exit
PB: predicated region body
PF: predicated region fallthrough
CT: control target
= control target key end

     0   :  { %10 = vsyncpa [#allocation3], 0  ;;  %s1320_s0 = inlined_call_operand.hbm [shape: f32[2,32,600], index: 0, kind: input, shape index: {}]   ;;  %s1321_s1 = inlined_call_operand.vmem [shape: f32[16,32], index: 1, kind: input, shape index: {}]   ;;  %s1322_s2 = inlined_call_operand.vmem [shape: f32[16,1], index: 2, kind: input, shape index: {}]   ;;  %s1323_s3 = inlined_call_operand.vmem [shape: f32[32,16], index: 3, kind: input, shape index: {}]   ;;  %s1324_s4 = inlined_call_operand.vmem [shape: f32[32,1], index: 4, kind: input, shape index: {}]   ;;  %s1325_s5 = inlined_call_operand.hbm [shape: f32[2,32,600], index: 5, kind: output, shape index: {}]  }
   0x1   :  { %12 = vsyncpa [#allocation3 + $0x1], 0 }
   0x2   :  { %13 = vsyncpa [#allocation4], 0 }
   0x3   :  { %15 = vsyncpa [#allocation4 + $0x1], 0  ;;  %s1013_s18 = smov 0   ;;  %s1015_s19 = smov 0  }
   0x4   :  { %s1017_s20 = smov 0   ;;  %s1019_s21 = smov 0  }
   0x5   :  { %s1021_s22 = smov 0   ;;  %s1023_s23 = smov 0  }
   0x6   :  { %s1025_s24 = smov 0   ;;  %s1027_s25 = smov 0  }
   0x7 LB: > { %1329 = sst [smem:[#allocation8_spill]] %s965_s23  ;;  %s687_s26 = sadd.s32 4294967295, %s973_s25   ;;  %s973_s25 = sphi %s1027_s25, %s21_s25   ;;  %s969_s24 = sphi %s1025_s24, %s1346_s24   ;;  %s965_s23 = sphi %s1023_s23, %s1340_s23   ;;  %s961_s22 = sphi %s1021_s22, %s1345_s22   ;;  %s957_s21 = sphi %s1019_s21, %s1339_s21   ;;  %s953_s20 = sphi %s1017_s20, %s1344_s20   ;;  %s949_s19 = sphi %s1015_s19, %s1343_s19   ;;  %s945_s18 = sphi %s1013_s18, %s1342_s18  }
   0x8   : > { %s688_s27 = sadd.s32 4294967294, %s973_s25   ;;  %s30_s28 = sadd.s32 1, %s965_s23 }
   0x9   : > { %p31_p0 = scmp.ge.s32.totalorder %s30_s28, 3  ;;  %s33_s29 = sadd.s32 1, %s969_s24 }
   0xa   : > { %p49_p1 = scmp.ne.s32.totalorder %s953_s20, %s949_s19  ;;  %p50_p2 = scmp.eq.s32.totalorder %s973_s25, 0 }
   0xb   : > { %s1348_s28 = smov (%p31_p0, %s30_s28), 0  ;;  %s1350_s29 = smov (!%p31_p0, %s33_s29), %s969_s24 }
   0xc   : > { %1330 = sst [smem:[#allocation9_spill]] %s1348_s28  ;;  %s38_s30 = ssub.s32 %s965_s23, %s1348_s28 }
   0xd   : > { %p1065_p3 = por %p50_p2, %p49_p1  ;;  %p35_p4 = scmp.ge.s32.totalorder %s1350_s29, 2 }
   0xe   : > { %p55_p5 = scmp.ne.s32.totalorder %s949_s19, %s945_s18  ;;  %p56_p6 = scmp.eq.s32.totalorder %s687_s26, 0 }
   0xf   : > { %p165_p7 = scmp.eq.s32.totalorder %s687_s26, 5  ;;  %s1352_s29 = smov (%p35_p4, %s1350_s29), 0 }
  0x10   : > { %1332 = sst [smem:[#allocation10_spill]] %s1352_s29  ;;  %p1073_p8 = por %p56_p6, %p55_p5 }
  0x11   : > { %p1077_p9 = por %p165_p7, %p49_p1  ;;  %s37_s9 = ssub.s32 %s969_s24, %s1352_s29 }
  0x12   : > { %p171_p10 = scmp.eq.s32.totalorder %s688_s27, 5  ;;  %s39_s10 = sor.u32 %s38_s30, %s37_s9 }
  0x13   : > { %s42_s11 = sadd.s32 1, %s953_s20  ;;  %p40_p11 = scmp.eq.s32.totalorder %s39_s10, 0 }
  0x14   : > { %p1084_p12 = por %p171_p10, %p55_p5  ;;  %p690_p13 = scmp.ge.s32.totalorder %s973_s25, 6 }
  0x15   : > { %s1089_s13 = scalar_select %p40_p11, %s953_s20, %s42_s11  }
  0x16   : > { %s1335_s12 = scalar_select %p1084_p12, 1, 0 }
  0x17   : > { %1336 = sst [smem:[#allocation11_spill]] %s1089_s13  ;;  %199 = sbr.rel (%p690_p13) target bundleno = 67 (0x43), region = 32 }
  0x1e   : > { %202 = sbr.rel (!%p1065_p3) target bundleno = 67 (0x43), region = 36  ;;  %s203_s14 = sand.u32 (%p1065_p3), 1, %s953_s20  }
  0x1f   : > { %s692_s15 = sshll.u32 (%p1065_p3), %s965_s23, 1  ;;  %s691_s16 = sshll.u32 (%p1065_p3), %s203_s14, 6 }
  0x20   : > { %s209_s17 = ssub.s32 (%p1065_p3), 5, %s692_s15  ;;  %s1102_s30 = scalar_lea.sflag (%p1065_p3), [#allocation3], %s203_s14 }
  0x21   : > { %p210_p0 = scmp.lt.s32.totalorder (%p1065_p3), %s209_s17, 2  ;;  %s207_s9 = scalar_lea.vmem (%p1065_p3), [#allocation2], %s691_s16 }
  0x25   : > { %s1354_s17 = smov (!%p210_p0, %s209_s17), 2 }
  0x26   : > { %s1099_s26 = sshll.u32 %s1354_s17, 9 }
  0x27   : > { %s214_s27 = ssub.s32 1024, %s1099_s26 }
  0x28   : > { %215 = vsyncadd %s1102_s30, %s214_s27  ;;  %p694_p1 = scmp.ne.s32.totalorder %s1099_s26, 0  ;;  %s734_s6 = smul.u32 20, %s969_s24 }
  0x29   : > { %s696_s10 = sshll.u32 %s1354_s17, 3  ;;  %s223_s11 = sshll.u32 %s207_s9, 4  ;;  %s1108_s11 = int_to_ptr.vmem [resolvable:$true] %s223_s11 }
  0x2a   : > { %s218_s29 = sadd.s32 %s734_s6, %s692_s15  ;;  %s851_s15 = scalar_lea.hbm %s1320_s0, 5120 }
  0x2b   : > { %s695_s28 = sshll.u32 %s218_s29, 7 }
  0x2c   : > { %s1113_s14 = scalar_lea.hbm %s1320_s0, %s695_s28 }
  0x2d   : > { %s847_s16 = scalar_lea.hbm %s1113_s14, %s1099_s26  ;;  %p852_p5 = scmp.lt.u32.totalorder %s1113_s14, %s1320_s0 }
  0x2e   : > { %p848_p2 = scmp.ne.s32.totalorder %s1113_s14, %s847_s16  ;;  %p853_p6 = scmp.lt.u32.totalorder %s851_s15, %s847_s16 }
  0x2f   : > { %p855_p10 = scmp.lt.u32.totalorder %s847_s16, %s1113_s14 }
  0x30   : > { %p849_p3 = pnand %p848_p2, %p694_p1  ;;  %p854_p7 = por %p853_p6, %p852_p5 }
  0x32   : > { %p850_p4 = pneg %p849_p3  ;;  %p856_p11 = por %p855_p10, %p854_p7 }
  0x34   : > { %p857_p13 = pnand %p856_p11, %p850_p4 }
  0x36   : > { %860 = shalt.err (!%p857_p13)
}
  0x37   : > { %s861_s23 = scalar_lea.vmem %s1108_s11, %s1099_s26  ;;  %s975_s28 = smov [#allocation2]  }
  0x38   : > { %p862_p0 = scmp.ne.s32.totalorder %s1108_s11, %s861_s23  ;;  %s865_s13 = sshll.u32 %s975_s28, 4  ;;  %s866_s13 = int_to_ptr.vmem [resolvable:$false] %s865_s13 }
  0x39   : > { %s867_s27 = scalar_lea.vmem %s866_s13, 2048  ;;  %p868_p12 = scmp.lt.s32.totalorder %s1108_s11, %s866_s13 }
  0x3a   : > { %p863_p2 = pnand %p862_p0, %p694_p1  ;;  %p869_p5 = scmp.lt.s32.totalorder %s867_s27, %s861_s23 }
  0x3c   : > { %p864_p3 = pneg %p863_p2  ;;  %p870_p6 = por %p869_p5, %p868_p12 }
  0x3e   : > { %p871_p7 = pnand %p870_p6, %p864_p3 }
  0x40   : > { %874 = shalt.err (!%p871_p7)
}
  0x41   : > { %s976_s16 = smov 640   ;;  %s977_s9 = smov 256  }
  0x42   : > { %229 = dma.hbm_to_vmem [thread:$0]  (%p694_p1), %s1113_s14, %s1099_s26, %s1108_s11, %s1102_s30, %s976_s16, %s977_s9, %s696_s10  }
  0x43 PF: > { %p699_p4 = scmp.ge.s32.totalorder %s973_s25, 1  ;;  %p231_p10 = scmp.lt.s32.totalorder %s973_s25, 7 }
  0x45   : > { %p232_p12 = pnand %p699_p4, %p231_p10 }
  0x46   : > { %s1145_s15 = sand.u32 (!%p232_p12), 1, %s949_s19  }
  0x47   : > { %235 = sbr.rel (%p232_p12) target bundleno = 607 (0x25f), region = 40  ;;  %s700_s6 = sshll.u32 (!%p232_p12), %s1145_s15, 6 }
  0x48   : > { %s238_s29 = scalar_lea.sflag (!%p232_p12), [#allocation3], %s1145_s15  ;;  %s241_s17 = scalar_lea.vmem (!%p232_p12), [#allocation2], %s700_s6 }
  0x4e   : > { %936 = dma.done.wait (%p1073_p8), %s238_s29, 1024  }
  0x4f   : > { %938 = vsyncadd (%p1073_p8), %s238_s29, 4294966272  ;;  %v978_v0 = vmov 0.0   ;;  %v979_v1 = vmov 0   ;;  %v1157_v2 = vld [vmem:[%s241_s17 + $0x8] sm:$0xff]  ;;  %v1159_v3 = vld [vmem:[%s241_s17 + $0x18] sm:$0xff]  ;;  %vm300_vm0 = vcmask 261120  }
  0x50   : > { %371 = vmatprep.mubr.f32.mxu0 %v978_v0  ;;  %813 = vset.pattern.permute.xlu0 %v979_v1  ;;  %v1161_v4 = vld [vmem:[%s241_s17] sm:$0xff]  ;;  %v722_v5 = vpack.c.bf16 %v1159_v3, %v1157_v2  ;;  %v1165_v6 = vld [vmem:[%s241_s17 + $0x10] sm:$0xff]  ;;  %v1167_v7 = vld [vmem:[%s241_s17 + $0x28] sm:$0xff]  ;;  %vm416_vm1 = vcmask 130048   ;;  %s1225_s16 = scalar_lea.vmem [#allocation5], %s700_s6  ;;  %s575_s6 = scalar_lea.sflag [#allocation4], %s1145_s15 }
  0x51   : > { %493 = vmatprep.mubr.f32.mxu1 %v978_v0  ;;  %814 = vset.pattern.permute.xlu1 %v979_v1  ;;  %v1169_v8 = vld [vmem:[%s241_s17 + $0x38] sm:$0xff]  ;;  %v724_v9 = vpack.c.bf16 %v1165_v6, %v1161_v4  ;;  %v1175_v11 = vld [vmem:[%s241_s17 + $0x20] sm:$0xff]  ;;  %v1177_v12 = vld [vmem:[%s241_s17 + $0x30] sm:$0xff]  ;;  %s709_s9 = sshll.u32 (%p1077_p9), %s957_s21, 1 }
  0x52   : > { %v726_v10 = vpack.c.bf16 %v1169_v8, %v1167_v7  ;;  %723 = vmatprep.subr.bf16.mxu0 %v722_v5  ;;  %v288_v13 = vld [vmem:[%s1322_s2] sm:$0xff]  ;;  %v728_v14 = vpack.c.bf16 %v1177_v12, %v1175_v11  ;;  %v289_v15 = vld [vmem:[%s1322_s2 + $0x8] sm:$0xff]  ;;  %v394_v17 = vld [vmem:[%s1324_s4 + $0x10] sm:$0xff]  ;;  %s583_s29 = ssub.s32 (%p1077_p9), 5, %s709_s9 }
  0x53   : > { %725 = vmatpush1.bf16.msra.mxu0 %v724_v9  ;;  %292 = vperm.xlu0 %813, %v288_v13   ;;  %v286_v16 = vld [vmem:[%s1321_s1] sm:$0xff]  ;;  %v287_v18 = vld [vmem:[%s1321_s1 + $0x8] sm:$0xff]  ;;  %v395_v21 = vld [vmem:[%s1324_s4 + $0x18] sm:$0xff]  ;;  %p584_p8 = scmp.lt.s32.totalorder (%p1077_p9), %s583_s29, 2 }
  0x54   : > { %727 = vmatprep.subr.bf16.mxu0 %v726_v10  ;;  %v392_v19 = vld [vmem:[%s1324_s4] sm:$0xff]  ;;  %v393_v20 = vld [vmem:[%s1324_s4 + $0x8] sm:$0xff]  ;;  %v390_v40 = vld [vmem:[%s1323_s3 + $0x10] sm:$0xff] }
  0x55   : > { %398 = vperm.xlu1 %814, %v392_v19   ;;  %v388_v38 = vld [vmem:[%s1323_s3] sm:$0xff]  ;;  %v389_v39 = vld [vmem:[%s1323_s3 + $0x8] sm:$0xff]  ;;  %v391_v41 = vld [vmem:[%s1323_s3 + $0x18] sm:$0xff] }
  0x57   : > { %729 = vmatpush1.bf16.msra.mxu0 %v728_v14  ;;  %297 = vperm.xlu0 %813, %v289_v15  }
  0x59   : > { %403 = vperm.xlu1 %814, %v393_v20  }
  0x5a   : > { %702 = vmatmul.mubr.msk.f32.vlgmr.msra.gmra.mrb[0].mxu0 %vm300_vm0, %v286_v16 }
  0x5b   : > { %377 = vmatprep.mubr.f32.mxu0 %v978_v0  ;;  %408 = vperm.xlu0 %813, %v394_v17  }
  0x5d   : > { %413 = vperm.xlu1 %814, %v395_v21  }
  0x5e   : > { %703 = vmatmul.mubr.msk.f32.gmra.mrb[2].mxu0 %vm300_vm0, %v287_v18 }
  0xd2   : > { %v293_v22 = vpop.permute.xlu0 %292 }
  0xd4   : > { %v399_v42 = vpop.permute.xlu1 %398 }
  0xd6   : > { %v298_v26 = vpop.permute.xlu0 %297 }
  0xd8   : > { %v404_v48 = vpop.permute.xlu1 %403 }
  0xda   : > { %v409_v57 = vpop.permute.xlu0 %408 }
  0xdc   : > { %v414_v5 = vpop.permute.xlu1 %413 }
 0x12d   : > { %v373_v23 = vpop.f32.mrb[0].mxu0 }
 0x12e   : > { %v375_v24 = vpop.f32.mrb[1].mxu0  ;;  %v374_v25 = vadd.f32 %v373_v23, %v293_v22 }
 0x12f   : > { %v376_v27 = vadd.f32 %v375_v24, %v293_v22 }
 0x130   : > { %v384_v32 = vmax.f32 %v374_v25, 0.0 }
 0x131   : > { %v379_v28 = vpop.f32.mrb[2].mxu0  ;;  %v385_v34 = vmax.f32 %v376_v27, 0.0 }
 0x132   : > { %v380_v29 = vadd.f32 %v379_v28, %v298_v26  ;;  %v381_v30 = vpop.f32.mrb[3].mxu0 }
 0x133   : > { %v382_v31 = vadd.f32 %v381_v30, %v298_v26 }
 0x134   : > { %v386_v33 = vmax.f32 %v380_v29, 0.0 }
 0x135   : > { %v387_v35 = vmax.f32 %v382_v31, 0.0 }
 0x136   : > { %v732_v36 = vpack.c.bf16 %v386_v33, %v384_v32 }
 0x137   : > { %v730_v37 = vpack.c.bf16 %v387_v35, %v385_v34 }
 0x139   : > { %731 = vmatprep.subr.bf16.mxu1 %v730_v37 }
 0x13a   : > { %733 = vmatpush1.bf16.msra.mxu1 %v732_v36 }
 0x13d   : > { %704 = vmatmul.mubr.msk.f32.vlgmr.msra.gmra.mrb[0].mxu1 %vm416_vm1, %v388_v38 }
 0x13e   : > { %499 = vmatprep.mubr.f32.mxu1 %v978_v0 }
 0x141   : > { %705 = vmatmul.mubr.msk.f32.gmra.mrb[2].mxu1 %vm416_vm1, %v389_v39 }
 0x142   : > { %505 = vmatprep.mubr.f32.mxu1 %v978_v0 }
 0x145   : > { %706 = vmatmul.mubr.msk.f32.gmra.mrb[4].mxu1 %vm416_vm1, %v390_v40 }
 0x146   : > { %511 = vmatprep.mubr.f32.mxu1 %v978_v0 }
 0x149   : > { %707 = vmatmul.mubr.msk.f32.gmra.mrb[6].mxu1 %vm416_vm1, %v391_v41 }
 0x210   : > { %v495_v43 = vpop.f32.mrb[0].mxu1 }
 0x211   : > { %v496_v44 = vadd.f32 %v495_v43, %v399_v42  ;;  %v497_v45 = vpop.f32.mrb[1].mxu1 }
 0x212   : > { %v498_v46 = vadd.f32 %v497_v45, %v399_v42 }
 0x213   : > { %v518_v47 = vsub.f32 0.0, %v496_v44 }
 0x214   : > { %v519_v49 = vsub.f32 0.0, %v498_v46  ;;  %v501_v50 = vpop.f32.mrb[2].mxu1 }
 0x215   : > { %v526_v51 = vmul.f32 1.442695, %v518_v47  ;;  %v502_v52 = vadd.f32 %v501_v50, %v404_v48  ;;  %v503_v53 = vpop.f32.mrb[3].mxu1 }
 0x216   : > { %v528_v54 = vmul.f32 1.442695, %v519_v49  ;;  %v504_v55 = vadd.f32 %v503_v53, %v404_v48 }
 0x217   : > { %815 = vpow2.f32 %v526_v51  ;;  %v520_v56 = vsub.f32 0.0, %v502_v52 }
 0x218   : > { %817 = vpow2.f32 %v528_v54  ;;  %v521_v58 = vsub.f32 0.0, %v504_v55  ;;  %v507_v59 = vpop.f32.mrb[4].mxu1 }
 0x219   : > { %v530_v60 = vmul.f32 1.442695, %v520_v56  ;;  %v508_v61 = vadd.f32 %v507_v59, %v409_v57  ;;  %v509_v62 = vpop.f32.mrb[5].mxu1 }
 0x21a   : > { %v532_v63 = vmul.f32 1.442695, %v521_v58  ;;  %v510_v0 = vadd.f32 %v509_v62, %v409_v57 }
 0x21b   : > { %819 = vpow2.f32 %v530_v60  ;;  %v522_v1 = vsub.f32 0.0, %v508_v61 }
 0x21c   : > { %821 = vpow2.f32 %v532_v63  ;;  %v523_v9 = vsub.f32 0.0, %v510_v0  ;;  %v513_v10 = vpop.f32.mrb[6].mxu1 }
 0x21d   : > { %v534_v13 = vmul.f32 1.442695, %v522_v1  ;;  %v514_v14 = vadd.f32 %v513_v10, %v414_v5  ;;  %v515_v15 = vpop.f32.mrb[7].mxu1 }
 0x21e   : > { %v536_v16 = vmul.f32 1.442695, %v523_v9  ;;  %v516_v17 = vadd.f32 %v515_v15, %v414_v5 }
 0x21f   : > { %823 = vpow2.f32 %v534_v13  ;;  %v524_v18 = vsub.f32 0.0, %v514_v14 }
 0x220   : > { %825 = vpow2.f32 %v536_v16  ;;  %v525_v19 = vsub.f32 0.0, %v516_v17 }
 0x221   : > { %v816_v20 = vpop.eup %815  ;;  %v538_v21 = vmul.f32 1.442695, %v524_v18 }
 0x222   : > { %v818_v22 = vpop.eup %817  ;;  %v542_v23 = vadd.f32 1.0, %v816_v20  ;;  %v540_v24 = vmul.f32 1.442695, %v525_v19 }
 0x223   : > { %v543_v25 = vadd.f32 1.0, %v818_v22  ;;  %827 = vpow2.f32 %v538_v21 }
 0x224   : > { %829 = vrcp.f32 %v542_v23 }
 0x225   : > { %v820_v26 = vpop.eup %819  ;;  %831 = vrcp.f32 %v543_v25 }
 0x226   : > { %v822_v27 = vpop.eup %821  ;;  %v544_v28 = vadd.f32 1.0, %v820_v26  ;;  %833 = vpow2.f32 %v540_v24 }
 0x227   : > { %v545_v29 = vadd.f32 1.0, %v822_v27 }
 0x228   : > { %835 = vrcp.f32 %v544_v28 }
 0x229   : > { %v824_v30 = vpop.eup %823  ;;  %837 = vrcp.f32 %v545_v29 }
 0x22a   : > { %v826_v31 = vpop.eup %825  ;;  %v546_v32 = vadd.f32 1.0, %v824_v30 }
 0x22b   : > { %v547_v33 = vadd.f32 1.0, %v826_v31 }
 0x22c   : > { %839 = vrcp.f32 %v546_v32 }
 0x22d   : > { %v828_v34 = vpop.eup %827  ;;  %841 = vrcp.f32 %v547_v33 }
 0x22e   : > { %v830_v35 = vpop.eup %829  ;;  %v548_v36 = vadd.f32 1.0, %v828_v34 }
 0x22f   : > { %v832_v37 = vpop.eup %831  ;;  %v558_v38 = vmul.f32 %v830_v35, %v1161_v4 }
 0x230   : > { %v834_v39 = vpop.eup %833  ;;  %v559_v40 = vmul.f32 %v832_v37, %v1157_v2  ;;  %843 = vrcp.f32 %v548_v36 }
 0x231   : > { %566 = vst [vmem:[%s1225_s16] sm:$0xff] %v558_v38  ;;  %v549_v41 = vadd.f32 1.0, %v834_v39 }
 0x232   : > { %v836_v42 = vpop.eup %835  ;;  %567 = vst [vmem:[%s1225_s16 + $0x8] sm:$0xff] %v559_v40 }
 0x233   : > { %v838_v43 = vpop.eup %837  ;;  %v560_v4 = vmul.f32 %v836_v42, %v1165_v6  ;;  %845 = vrcp.f32 %v549_v41 }
 0x234   : > { %v561_v2 = vmul.f32 %v838_v43, %v1159_v3 }
 0x235   : > { %568 = vst [vmem:[%s1225_s16 + $0x10] sm:$0xff] %v560_v4 }
 0x236   : > { %v840_v44 = vpop.eup %839  ;;  %569 = vst [vmem:[%s1225_s16 + $0x18] sm:$0xff] %v561_v2 }
 0x237   : > { %v842_v45 = vpop.eup %841  ;;  %v562_v46 = vmul.f32 %v840_v44, %v1175_v11 }
 0x238   : > { %v563_v47 = vmul.f32 %v842_v45, %v1167_v7 }
 0x239   : > { %570 = vst [vmem:[%s1225_s16 + $0x20] sm:$0xff] %v562_v46 }
 0x23a   : > { %v844_v48 = vpop.eup %843  ;;  %571 = vst [vmem:[%s1225_s16 + $0x28] sm:$0xff] %v563_v47  ;;  %581 = sbr.rel (!%p1077_p9) target bundleno = 607 (0x25f), region = 48 }
 0x23b   : > { %v564_v49 = vmul.f32 %v844_v48, %v1177_v12 }
 0x23d   : > { %v846_v50 = vpop.eup %845  ;;  %572 = vst [vmem:[%s1225_s16 + $0x30] sm:$0xff] %v564_v49 }
 0x23e   : > { %v565_v6 = vmul.f32 %v846_v50, %v1169_v8 }
 0x240   : > { %573 = vst [vmem:[%s1225_s16 + $0x38] sm:$0xff] %v565_v6 }
 0x241   : > { %s1356_s29 = smov (!%p584_p8, %s583_s29), 2 }
 0x242   : > { %s1248_s17 = sshll.u32 %s1356_s29, 9 }
 0x243   : > { %s588_s7 = ssub.s32 1024, %s1248_s17 }
 0x244   : > { %589 = vsyncadd %s575_s6, %s588_s7  ;;  %p711_p9 = scmp.ne.s32.totalorder %s1248_s17, 0  ;;  %s735_s8 = smul.u32 20, %s961_s22 }
 0x245   : > { %s713_s21 = sshll.u32 %s1356_s29, 3  ;;  %s597_s26 = sshll.u32 %s1225_s16, 4  ;;  %s1257_s26 = int_to_ptr.vmem [resolvable:$true] %s597_s26 }
 0x246   : > { %s592_s30 = sadd.s32 %s735_s8, %s709_s9  ;;  %s875_s28 = scalar_lea.vmem %s1257_s26, %s1248_s17 }
 0x247   : > { %s712_s10 = sshll.u32 %s592_s30, 7  ;;  %p876_p1 = scmp.ne.s32.totalorder %s1257_s26, %s875_s28 }
 0x248   : > { %s1262_s23 = scalar_lea.hbm %s1325_s5, %s712_s10  ;;  %s980_s22 = smov [#allocation5]  }
 0x249   : > { %p877_p11 = pnand %p876_p1, %p711_p9  ;;  %s879_s13 = sshll.u32 %s980_s22, 4  ;;  %s880_s13 = int_to_ptr.vmem [resolvable:$false] %s879_s13 }
 0x24a   : > { %s881_s27 = scalar_lea.vmem %s880_s13, 2048  ;;  %p882_p0 = scmp.lt.s32.totalorder %s1257_s26, %s880_s13 }
 0x24b   : > { %p878_p13 = pneg %p877_p11  ;;  %p883_p2 = scmp.lt.s32.totalorder %s881_s27, %s875_s28 }
 0x24d   : > { %p884_p3 = por %p883_p2, %p882_p0 }
 0x24f   : > { %p885_p5 = pnand %p884_p3, %p878_p13 }
 0x251   : > { %888 = shalt.err (!%p885_p5)
}
 0x252   : > { %s889_s16 = scalar_lea.hbm %s1262_s23, %s1248_s17  ;;  %s893_s8 = scalar_lea.hbm %s1325_s5, 5120 }
 0x253   : > { %p890_p6 = scmp.ne.s32.totalorder %s1262_s23, %s889_s16  ;;  %p894_p10 = scmp.lt.u32.totalorder %s1262_s23, %s1325_s5 }
 0x254   : > { %p895_p12 = scmp.lt.u32.totalorder %s893_s8, %s889_s16  ;;  %p897_p1 = scmp.lt.u32.totalorder %s889_s16, %s1262_s23 }
 0x255   : > { %p891_p7 = pnand %p890_p6, %p711_p9 }
 0x256   : > { %p896_p8 = por %p895_p12, %p894_p10 }
 0x257   : > { %p892_p4 = pneg %p891_p7 }
 0x258   : > { %p898_p11 = por %p897_p1, %p896_p8 }
 0x25a   : > { %p899_p13 = pnand %p898_p11, %p892_p4 }
 0x25c   : > { %902 = shalt.err (!%p899_p13)
}
 0x25d   : > { %s981_s11 = smov 256   ;;  %s982_s14 = smov 640  }
 0x25e   : > { %603 = dma.vmem_to_hbm [thread:$0]  (%p711_p9), %s1257_s26, %s1248_s17, %s1262_s23, %s575_s6, %s981_s11, %s982_s14, %s713_s21  }
 0x25f PF: > { %p742_p0 = scmp.ge.s32.totalorder %s973_s25, 2  ;;  %s612_s28 = sand.u32 1, %s945_s18  }
 0x260   : > { %p1337_p2 = scmp.ne.s32.totalorder %s1335_s12, 0  ;;  %s613_s22 = scalar_lea.sflag [#allocation4], %s612_s28 }
 0x262   : > { %p739_p3 = pnand %p742_p0, %p1337_p2 }
 0x264   : > { %940 = dma.done.wait (!%p739_p3), %s613_s22, 1024  }
 0x265   : > { %942 = vsyncadd (!%p739_p3), %s613_s22, 4294966272  ;;  %s21_s25 = sadd.s32 1, %s973_s25   ;;  %s1338_s29 = sld [smem:[#allocation11_spill]] }
 0x266   : > { %p18_p5 = scmp.ge.s32.totalorder %s21_s25, 8   ;;  %s1339_s21 = sld [smem:[#allocation8_spill]] }
 0x267   : > { %s1340_s23 = sld [smem:[#allocation9_spill]]  ;;  %s1341_s15 = sld [smem:[#allocation10_spill]] }
 0x268   : > { %s1342_s18 = smov %s949_s19  ;;  %s1343_s19 = smov %s953_s20 }
 0x269   : > { %s1345_s22 = smov %s969_s24  ;;  %20 = sbr.rel (!%p18_p5) target bundleno = 7 (0x7), region = 85 }
 0x26b   : > { %s1344_s20 = smov %s1338_s29 }
 0x26d   : > { %s1346_s24 = smov %s1341_s15 }
 0x270   :  { %618 = vsyncpa [#allocation3], 1 }
 0x271   :  { %620 = vsyncpa [#allocation3 + $0x1], 1 }
 0x272   :  { %621 = vsyncpa [#allocation4], 1 }
 0x273   :  { %623 = vsyncpa [#allocation4 + $0x1], 1 }

</bundles_post_ra>
